<compile_context>
chip_gen: v7x
topology: tpu7x:2x2x1
jax: 0.10.0
libtpu: 0.0.40
codegen_flags: <defaults>
</compile_context>

<pallas_src>
import functools
import math

import jax
import jax.numpy as jnp
from jax.experimental import pallas as pl
from jax.experimental.pallas import tpu as pltpu


# ----------------------------- Pallas kernel -------------------------------- #

def _disc_kernel(ht_ref, ct_ref, wt_ref, b_ref, out_ref):
    # ht_ref : [Hp, TN]        h_pl^T column block (nodes on lanes)
    # ct_ref : [R1, Hp, TN]    stacked (shifted) contexts, transposed
    # wt_ref : [Hp, Hp]        bilinear weight transposed (W[0].T), resident
    # b_ref  : [1, 1]          bilinear bias
    # out_ref: [R1, TN]        logits block (rounds on sublanes, nodes on lanes)
    # u[b, i] = sum_a W[a, b] * h_pl[i, a]  -> single MXU matmul per node block.
    u = jnp.dot(wt_ref[...], ht_ref[...], preferred_element_type=jnp.float32)  # [Hp, TN]
    # score[r, i] = sum_b u[b, i] * c_r[i, b] + bias  (VPU multiply + sublane reduce,
    # all rounds at once, then one full lane-dense store).
    scores = jnp.sum(u[None, :, :] * ct_ref[...], axis=1)                       # [R1, TN]
    out_ref[...] = scores + b_ref[...]


# ------------------------------- wrapper ------------------------------------ #

def _round_up(x, m):
    return (x + m - 1) // m * m


@functools.partial(jax.jit, static_argnames=("negsamp_round",))
def contextual_discriminator_forward(params, c, h_pl, negsamp_round):
    N, H = c.shape
    R1 = negsamp_round + 1

    # Negative-sampling shifts (exact transcription of the torch cat pattern).
    shifted = [c]
    c_mi = c
    for _ in range(negsamp_round):
        c_mi = jnp.concatenate([c_mi[-2:-1, :], c_mi[:-1, :]], axis=0)
        shifted.append(c_mi)
    c_all = jnp.stack(shifted, axis=0)                                    # [R1, N, H]

    # Pad: features to a sublane multiple, nodes to the lane tile. Zero padding is
    # exact (padded rows/cols contribute 0 to the bilinear form and are sliced off).
    Hp = _round_up(H, 8)
    tile_n = min(512, _round_up(N, 128))                                  # lane-dense tile
    Np = _round_up(N, tile_n)

    ht = jnp.zeros((Hp, Np), jnp.float32).at[:H, :N].set(h_pl.T.astype(jnp.float32))
    ct = jnp.zeros((R1, Hp, Np), jnp.float32).at[:, :H, :N].set(
        jnp.transpose(c_all, (0, 2, 1)).astype(jnp.float32))
    wt = jnp.zeros((Hp, Hp), jnp.float32).at[:H, :H].set(
        params["W"][0].T.astype(jnp.float32))
    b2 = params["b"].reshape(1, 1).astype(jnp.float32)

    grid = (Np // tile_n,)
    out = pl.pallas_call(
        _disc_kernel,
        out_shape=jax.ShapeDtypeStruct((R1, Np), jnp.float32),
        grid=grid,
        in_specs=[
            pl.BlockSpec((Hp, tile_n), lambda j: (0, j)),         # h_pl^T block
            pl.BlockSpec((R1, Hp, tile_n), lambda j: (0, 0, j)),  # shifted contexts
            pl.BlockSpec((Hp, Hp), lambda j: (0, 0)),             # bilinear weight (resident)
            pl.BlockSpec((1, 1), lambda j: (0, 0)),               # bias (resident)
        ],
        out_specs=pl.BlockSpec((R1, tile_n), lambda j: (0, j)),
        compiler_params=pltpu.CompilerParams(
            dimension_semantics=("parallel",)),                   # node blocks independent
        cost_estimate=pl.CostEstimate(
            flops=2 * Hp * Hp * Np + 3 * R1 * Hp * Np,
            transcendentals=0,
            bytes_accessed=4 * (Hp * Np + R1 * Hp * Np + Hp * Hp + R1 * Np),
        ),
    )(ht, ct, wt, b2)

    # Restore PyTorch layout/ordering: cat over rounds of [N, 1] score columns.
    logits = out[:, :N].reshape(-1)[:, None]                              # [(R+1)*N, 1]
    return logits


# --------------------------- reference & setup ------------------------------ #

def init_params(key, n_h):
    # nn.Bilinear(n_h, n_h, 1) with xavier_uniform_ weight and zero bias.
    bound = math.sqrt(6.0 / (n_h + n_h))
    W = jax.random.uniform(key, (1, n_h, n_h), jnp.float32, -bound, bound)
    b = jnp.zeros((1,), jnp.float32)
    return {"W": W, "b": b}


def reference_forward(params, c, h_pl, negsamp_round):
    """Pure-JAX transcription of the PyTorch forward (for correctness check)."""
    W0, b = params["W"][0], params["b"]

    def f_k(x1, x2):
        return jnp.sum((x1 @ W0) * x2, axis=-1, keepdims=True) + b        # [N, 1]

    scs = [f_k(h_pl, c)]
    c_mi = c
    for _ in range(negsamp_round):
        c_mi = jnp.concatenate([c_mi[-2:-1, :], c_mi[:-1, :]], axis=0)
        scs.append(f_k(h_pl, c_mi))
    return jnp.concatenate(scs, axis=0)                                   # [(R+1)*N, 1]


if __name__ == "__main__":
    # Small, TPU-friendly shapes: N=300 nodes (exercises lane padding), n_h=64 hidden
    # dim, negsamp_round=2.
    N, H, R = 300, 64, 2
    key = jax.random.PRNGKey(0)
    kc, kh, kp = jax.random.split(key, 3)

    c = jax.random.normal(kc, (N, H), jnp.float32)
    h_pl = jax.random.normal(kh, (N, H), jnp.float32)
    params = init_params(kp, H)

    logits = contextual_discriminator_forward(params, c, h_pl, R)
    jax.block_until_ready(logits)

    ref = reference_forward(params, c, h_pl, R)
    assert logits.shape == ((R + 1) * N, 1)
    assert jnp.allclose(logits, ref, atol=1e-4, rtol=1e-4)
    print("KERNEL_OK")
</pallas_src>

<mosaic_0001>
module attributes {stable_mosaic.version = 11 : i64} {
  func.func @_disc_kernel(%arg0: i32, %arg1: memref<64x384xf32, #tpu.memory_space<vmem>>, %arg2: memref<3x64x384xf32, #tpu.memory_space<vmem>>, %arg3: memref<64x64xf32, #tpu.memory_space<vmem>>, %arg4: memref<1x1xf32, #tpu.memory_space<vmem>>, %arg5: memref<3x384xf32, #tpu.memory_space<vmem>>) attributes {dimension_semantics = [#tpu.dimension_semantics<parallel>], iteration_bounds = array<i64: 1>, scalar_prefetch = 0 : i64, scratch_operands = 0 : i64, tpu.core_type = #tpu.core_type<tc>, window_params = [{transform_indices = @transform_0, window_bounds = array<i64: 64, 384>}, {transform_indices = @transform_1, window_bounds = array<i64: 3, 64, 384>}, {pipeline_mode = #tpu.pipeline_mode<synchronous>, transform_indices = @transform_2, window_bounds = array<i64: 64, 64>}, {pipeline_mode = #tpu.pipeline_mode<synchronous>, transform_indices = @transform_3, window_bounds = array<i64: 1, 1>}, {transform_indices = @transform_4, window_bounds = array<i64: 3, 384>}]} {
    %c0 = arith.constant 0 : index
    %c0_0 = arith.constant 0 : index
    %0 = vector.load %arg3[%c0, %c0_0] : memref<64x64xf32, #tpu.memory_space<vmem>>, vector<64x64xf32>
    %c0_1 = arith.constant 0 : index
    %c0_2 = arith.constant 0 : index
    %1 = vector.load %arg1[%c0_1, %c0_2] : memref<64x384xf32, #tpu.memory_space<vmem>>, vector<64x384xf32>
    %cst = arith.constant dense<0.000000e+00> : vector<64x384xf32>
    %2 = tpu.matmul %0, %1, %cst {dimension_numbers = #tpu.dot_dimension_numbers<[1], [0], [0], [1], [0, 0, 1, 1], [], []>} : vector<64x64xf32>, vector<64x384xf32>, vector<64x384xf32> -> vector<64x384xf32>
    %3 = vector.shape_cast %2 : vector<64x384xf32> to vector<1x64x384xf32>
    %c0_3 = arith.constant 0 : index
    %c0_4 = arith.constant 0 : index
    %c0_5 = arith.constant 0 : index
    %4 = vector.load %arg2[%c0_3, %c0_4, %c0_5] : memref<3x64x384xf32, #tpu.memory_space<vmem>>, vector<3x64x384xf32>
    %5 = vector.broadcast %3 : vector<1x64x384xf32> to vector<3x64x384xf32>
    %6 = arith.mulf %5, %4 : vector<3x64x384xf32>
    %cst_6 = arith.constant dense<0.000000e+00> : vector<3x384xf32>
    %7 = vector.multi_reduction <add>, %6, %cst_6 [1] : vector<3x64x384xf32> to vector<3x384xf32>
    %c0_7 = arith.constant 0 : index
    %c0_8 = arith.constant 0 : index
    %8 = vector.load %arg4[%c0_7, %c0_8] : memref<1x1xf32, #tpu.memory_space<vmem>>, vector<1x1xf32>
    %9 = vector.broadcast %8 : vector<1x1xf32> to vector<3x384xf32>
    %10 = arith.addf %7, %9 : vector<3x384xf32>
    %c0_9 = arith.constant 0 : index
    %c0_10 = arith.constant 0 : index
    %11 = vector.load %arg5[%c0_9, %c0_10] : memref<3x384xf32, #tpu.memory_space<vmem>>, vector<3x384xf32>
    tpu.vector_store %arg5[%c0_9, %c0_10], %10 {strides = array<i32>} : memref<3x384xf32, #tpu.memory_space<vmem>>, vector<3x384xf32>,
    return
  }
  func.func @transform_0(%arg0: i32) -> (i32, i32) {
    %c0_i32 = arith.constant 0 : i32
    %c0_i32_0 = arith.constant 0 : i32
    return %c0_i32, %arg0 : i32, i32
  }
  func.func @transform_1(%arg0: i32) -> (i32, i32, i32) {
    %c0_i32 = arith.constant 0 : i32
    %c0_i32_0 = arith.constant 0 : i32
    %c0_i32_1 = arith.constant 0 : i32
    return %c0_i32, %c0_i32_0, %arg0 : i32, i32, i32
  }
  func.func @transform_2(%arg0: i32) -> (i32, i32) {
    %c0_i32 = arith.constant 0 : i32
    %c0_i32_0 = arith.constant 0 : i32
    %c0_i32_1 = arith.constant 0 : i32
    return %c0_i32, %c0_i32_0 : i32, i32
  }
  func.func @transform_3(%arg0: i32) -> (i32, i32) {
    %c0_i32 = arith.constant 0 : i32
    %c0_i32_0 = arith.constant 0 : i32
    %c0_i32_1 = arith.constant 0 : i32
    return %c0_i32, %c0_i32_0 : i32, i32
  }
  func.func @transform_4(%arg0: i32) -> (i32, i32) {
    %c0_i32 = arith.constant 0 : i32
    %c0_i32_0 = arith.constant 0 : i32
    return %c0_i32, %arg0 : i32, i32
  }
}

</mosaic_0001>

<bundles_post_ra>
// kernel: contextual_discriminator_forward.1
= control target key start
LH: loop header
LB: loop body
LE: loop exit
PB: predicated region body
PF: predicated region fallthrough
CT: control target
= control target key end

     0   :  { %v706_v3 = vmov 0.0   ;;  %v707_v4 = vmov 0   ;;  %vm51_vm0 = vcmask 523264   ;;  %vm587_vm1 = vcmask 1041409   ;;  %s1095_s0 = inlined_call_operand.vmem [shape: f32[64,384], index: 0, kind: input, shape index: {}]   ;;  %s1096_s3 = inlined_call_operand.<no memory space> [shape: f32[1,1], index: 3, kind: input, shape index: {}]   ;;  %s1097_s2 = inlined_call_operand.vmem [shape: f32[64,64], index: 2, kind: input, shape index: {}]   ;;  %s1098_s1 = inlined_call_operand.vmem [shape: f32[3,64,384], index: 1, kind: input, shape index: {}]   ;;  %s1099_s4 = inlined_call_operand.vmem [shape: f32[3,384], index: 4, kind: output, shape index: {}]  }
   0x1   :  { %v28_v0 = vld [vmem:[%s1095_s0 + $0x8] sm:$0xff]  ;;  %v31_v1 = vld [vmem:[%s1095_s0 + $0x20] sm:$0xff]  ;;  %140 = vmatprep.mubr.f32.mxu0 %v706_v3  ;;  %705 = vset.pattern.permute.xlu0 %v707_v4  ;;  %v9_v5 = vstv %s1096_s3  ;;  %v30_v7 = vld [vmem:[%s1095_s0 + $0x18] sm:$0xff]  ;;  %vm589_vm2 = vcmask 1045509   ;;  %vm592_vm3 = vcmask 1042434   ;;  %vm594_vm4 = vcmask 1046534  }
   0x2   :  { %v27_v2 = vld [vmem:[%s1095_s0] sm:$0xff]  ;;  %v671_v6 = vpack.c.bf16 %v31_v1, %v28_v0  ;;  %v34_v8 = vld [vmem:[%s1095_s0 + $0x38] sm:$0xff]  ;;  %v37_v9 = vld [vmem:[%s1095_s0 + $0x50] sm:$0xff]  ;;  %10 = vst [vmem:[#allocation2] sm:$0x1] %v9_v5 }
   0x3   :  { %v673_v10 = vpack.c.bf16 %v30_v7, %v27_v2  ;;  %v675_v11 = vpack.c.bf16 %v37_v9, %v34_v8  ;;  %v29_v12 = vld [vmem:[%s1095_s0 + $0x10] sm:$0xff]  ;;  %v32_v13 = vld [vmem:[%s1095_s0 + $0x28] sm:$0xff]  ;;  %v43_v18 = vld [vmem:[%s1095_s0 + $0x80] sm:$0xff] }
   0x4   :  { %v33_v14 = vld [vmem:[%s1095_s0 + $0x30] sm:$0xff]  ;;  %672 = vmatprep.subr.bf16.mxu0 %v671_v6  ;;  %v687_v15 = vpack.c.bf16 %v32_v13, %v29_v12  ;;  %v36_v16 = vld [vmem:[%s1095_s0 + $0x48] sm:$0xff]  ;;  %v35_v20 = vld [vmem:[%s1095_s0 + $0x40] sm:$0xff] }
   0x5   :  { %v40_v17 = vld [vmem:[%s1095_s0 + $0x68] sm:$0xff]  ;;  %674 = vmatpush1.bf16.msra.mxu0 %v673_v10  ;;  %v677_v19 = vpack.c.bf16 %v36_v16, %v33_v14  ;;  %v38_v21 = vld [vmem:[%s1095_s0 + $0x58] sm:$0xff]  ;;  %v39_v24 = vld [vmem:[%s1095_s0 + $0x60] sm:$0xff] }
   0x6   :  { %676 = vmatprep.subr.bf16.mxu0 %v675_v11  ;;  %688 = vmatprep.subr.bf16.mxu1 %v687_v15  ;;  %v679_v22 = vpack.c.bf16 %v43_v18, %v40_v17  ;;  %v691_v23 = vpack.c.bf16 %v38_v21, %v35_v20  ;;  %v42_v25 = vld [vmem:[%s1095_s0 + $0x78] sm:$0xff]  ;;  %v49_v27 = vld [vmem:[%s1095_s0 + $0xb0] sm:$0xff]  ;;  %v44_v29 = vld [vmem:[%s1095_s0 + $0x88] sm:$0xff] }
   0x7   :  { %v46_v26 = vld [vmem:[%s1095_s0 + $0x98] sm:$0xff]  ;;  %690 = vmatpush3.bf16.msra.mxu1 %v687_v15  ;;  %v41_v28 = vld [vmem:[%s1095_s0 + $0x70] sm:$0xff]  ;;  %v19_v31 = vld [vmem:[%s1097_s2] sm:$0xff]  ;;  %v681_v32 = vpack.c.bf16 %v42_v25, %v39_v24 }
   0x8   :  { %692 = vmatprep.subr.bf16.mxu1 %v691_v23  ;;  %v695_v30 = vpack.c.bf16 %v44_v29, %v41_v28  ;;  %v47_v33 = vld [vmem:[%s1095_s0 + $0xa0] sm:$0xff]  ;;  %v50_v34 = vld [vmem:[%s1095_s0 + $0xb8] sm:$0xff]  ;;  %659 = vmatprep.mubr.msk.f32.mxu1 %vm51_vm0, %v19_v31  ;;  %v683_v35 = vpack.c.bf16 %v49_v27, %v46_v26  ;;  %v45_v36 = vld [vmem:[%s1095_s0 + $0x90] sm:$0xff] }
   0x9   :  { %678 = vmatpush1.bf16.msra.mxu0 %v677_v19  ;;  %v48_v37 = vld [vmem:[%s1095_s0 + $0xa8] sm:$0xff]  ;;  %v626_v38 = vld [vmem:[#allocation2] ss:$0 sm:$0xff]  ;;  %v699_v39 = vpack.c.bf16 %v50_v34, %v47_v33  ;;  %v21_v42 = vld [vmem:[%s1097_s2 + $0x10] sm:$0xff] }
   0xa   :  { %680 = vmatprep.subr.bf16.mxu0 %v679_v22  ;;  %562 = vperm.xlu0 %705, %v626_v38   ;;  %v685_v40 = vpack.c.bf16 %v48_v37, %v45_v36  ;;  %v20_v41 = vld [vmem:[%s1097_s2 + $0x8] sm:$0xff]  ;;  %v22_v43 = vld [vmem:[%s1097_s2 + $0x18] sm:$0xff]  ;;  %v23_v44 = vld [vmem:[%s1097_s2 + $0x20] sm:$0xff] }
   0xb   :  { %694 = vmatpush3.bf16.msra.mxu1 %v691_v23  ;;  %v24_v45 = vld [vmem:[%s1097_s2 + $0x28] sm:$0xff]  ;;  %v25_v46 = vld [vmem:[%s1097_s2 + $0x30] sm:$0xff]  ;;  %v26_v47 = vld [vmem:[%s1097_s2 + $0x38] sm:$0xff] }
   0xc   :  { %696 = vmatprep.subr.bf16.mxu1 %v695_v30  ;;  %v294_v48 = vld [vmem:[%s1098_s1] sm:$0xff]  ;;  %v295_v51 = vld [vmem:[%s1098_s1 + $0x8] sm:$0xff]  ;;  %v320_v57 = vld [vmem:[%s1098_s1 + $0xd0] sm:$0xff] }
   0xd   :  { %682 = vmatpush1.bf16.msra.mxu0 %v681_v32  ;;  %v318_v49 = vld [vmem:[%s1098_s1 + $0xc0] sm:$0xff]  ;;  %v319_v52 = vld [vmem:[%s1098_s1 + $0xc8] sm:$0xff]  ;;  %v296_v60 = vld [vmem:[%s1098_s1 + $0x10] sm:$0xff] }
   0xe   :  { %684 = vmatprep.subr.bf16.mxu0 %v683_v35  ;;  %v342_v50 = vld [vmem:[%s1098_s1 + $0x180] sm:$0xff]  ;;  %v343_v54 = vld [vmem:[%s1098_s1 + $0x188] sm:$0xff]  ;;  %v344_v61 = vld [vmem:[%s1098_s1 + $0x190] sm:$0xff] }
   0xf   :  { %698 = vmatpush3.bf16.msra.mxu1 %v695_v30  ;;  %v299_v55 = vld [vmem:[%s1098_s1 + $0x28] sm:$0xff]  ;;  %v297_v1 = vld [vmem:[%s1098_s1 + $0x18] sm:$0xff]  ;;  %v298_v7 = vld [vmem:[%s1098_s1 + $0x20] sm:$0xff] }
  0x10   :  { %700 = vmatprep.subr.bf16.mxu1 %v699_v39  ;;  %v323_v56 = vld [vmem:[%s1098_s1 + $0xe8] sm:$0xff]  ;;  %v321_v2 = vld [vmem:[%s1098_s1 + $0xd8] sm:$0xff]  ;;  %v322_v8 = vld [vmem:[%s1098_s1 + $0xe0] sm:$0xff] }
  0x11   :  { %686 = vmatpush1.bf16.msra.mxu0 %v685_v40  ;;  %v347_v59 = vld [vmem:[%s1098_s1 + $0x1a8] sm:$0xff]  ;;  %v346_v9 = vld [vmem:[%s1098_s1 + $0x1a0] sm:$0xff]  ;;  %v300_v23 = vld [vmem:[%s1098_s1 + $0x30] sm:$0xff] }
  0x12   :  { %v324_v24 = vld [vmem:[%s1098_s1 + $0xf0] sm:$0xff]  ;;  %v301_v32 = vld [vmem:[%s1098_s1 + $0x38] sm:$0xff] }
  0x13   :  { %702 = vmatpush3.bf16.msra.mxu1 %v699_v39  ;;  %v348_v29 = vld [vmem:[%s1098_s1 + $0x1b0] sm:$0xff]  ;;  %v329_v37 = vld [vmem:[%s1098_s1 + $0x118] sm:$0xff] }
  0x14   :  { %610 = vmatmul.mubr.msk.f32.vlgmr.msra.gmra.mrb[0].mxu0 %vm51_vm0, %v19_v31  ;;  %v305_v31 = vld [vmem:[%s1098_s1 + $0x58] sm:$0xff] }
  0x15   :  { %146 = vmatprep.mubr.f32.mxu0 %v706_v3  ;;  %v353_v38 = vld [vmem:[%s1098_s1 + $0x1d8] sm:$0xff] }
  0x16   :  { %660 = vmatmul.mubr.msk.f32.vlgmr.msra.gmra.mrb[0].mxu1 %vm51_vm0, %v20_v41  ;;  %v325_v39 = vld [vmem:[%s1098_s1 + $0xf8] sm:$0xff] }
  0x17   :  { %662 = vmatprep.mubr.msk.f32.mxu1 %vm51_vm0, %v21_v42 }
  0x18   :  { %611 = vmatmul.mubr.msk.f32.gmra.mrb[2].mxu0 %vm51_vm0, %v20_v41 }
  0x19   :  { %152 = vmatprep.mubr.f32.mxu0 %v706_v3 }
  0x1a   :  { %663 = vmatmul.mubr.msk.f32.gmra.mrb[2].mxu1 %vm51_vm0, %v22_v43 }
  0x1b   :  { %665 = vmatprep.mubr.msk.f32.mxu1 %vm51_vm0, %v23_v44 }
  0x1c   :  { %612 = vmatmul.mubr.msk.f32.gmra.mrb[4].mxu0 %vm51_vm0, %v21_v42 }
  0x1d   :  { %158 = vmatprep.mubr.f32.mxu0 %v706_v3 }
  0x1e   :  { %666 = vmatmul.mubr.msk.f32.gmra.mrb[4].mxu1 %vm51_vm0, %v24_v45 }
  0x1f   :  { %668 = vmatprep.mubr.msk.f32.mxu1 %vm51_vm0, %v25_v46 }
  0x20   :  { %613 = vmatmul.mubr.msk.f32.gmra.mrb[6].mxu0 %vm51_vm0, %v22_v43 }
  0x21   :  { %164 = vmatprep.mubr.f32.mxu0 %v706_v3 }
  0x22   :  { %669 = vmatmul.mubr.msk.f32.gmra.mrb[6].mxu1 %vm51_vm0, %v26_v47 }
  0x24   :  { %614 = vmatmul.mubr.msk.f32.gmra.mrb[8].mxu0 %vm51_vm0, %v23_v44 }
  0x25   :  { %170 = vmatprep.mubr.f32.mxu0 %v706_v3 }
  0x28   :  { %615 = vmatmul.mubr.msk.f32.gmra.mrb[10].mxu0 %vm51_vm0, %v24_v45 }
  0x29   :  { %176 = vmatprep.mubr.f32.mxu0 %v706_v3 }
  0x2c   :  { %616 = vmatmul.mubr.msk.f32.gmra.mrb[12].mxu0 %vm51_vm0, %v25_v46  ;;  %v349_v46 = vld [vmem:[%s1098_s1 + $0x1b8] sm:$0xff] }
  0x2d   :  { %182 = vmatprep.mubr.f32.mxu0 %v706_v3  ;;  %v345_v3 = vld [vmem:[%s1098_s1 + $0x198] sm:$0xff] }
  0x30   :  { %617 = vmatmul.mubr.msk.f32.gmra.mrb[14].mxu0 %vm51_vm0, %v26_v47 }
  0xe7   :  { %v142_v53 = vpop.f32.mrb[0].mxu0 }
  0xe8   :  { %v144_v58 = vpop.f32.mrb[1].mxu0  ;;  %v366_v62 = vmul.f32 %v294_v48, %v142_v53  ;;  %v390_v63 = vmul.f32 %v318_v49, %v142_v53  ;;  %v414_v0 = vmul.f32 %v342_v50, %v142_v53  ;;  %v326_v53 = vld [vmem:[%s1098_s1 + $0x100] sm:$0xff] }
  0xe9   :  { %v661_v4 = vpop.f32.mrb[0].mxu1  ;;  %v367_v5 = vmul.f32 %v295_v51, %v144_v58  ;;  %v391_v6 = vmul.f32 %v319_v52, %v144_v58  ;;  %v415_v18 = vmul.f32 %v343_v54, %v144_v58  ;;  %v302_v52 = vld [vmem:[%s1098_s1 + $0x40] sm:$0xff] }
  0xea   :  { %v371_v10 = vmul.f32 %v661_v4, %v299_v55  ;;  %v395_v11 = vmul.f32 %v661_v4, %v323_v56  ;;  %v255_v12 = vpop.f32.mrb[1].mxu1  ;;  %v419_v14 = vmul.f32 %v661_v4, %v347_v59  ;;  %v350_v58 = vld [vmem:[%s1098_s1 + $0x1c0] sm:$0xff]  ;;  %v303_v59 = vld [vmem:[%s1098_s1 + $0x48] sm:$0xff] }
  0xeb   :  { %v148_v13 = vpop.f32.mrb[2].mxu0  ;;  %v368_v15 = vmul.f32 %v296_v60, %v255_v12  ;;  %v392_v16 = vmul.f32 %v320_v57, %v255_v12  ;;  %v416_v17 = vmul.f32 %v344_v61, %v255_v12  ;;  %v327_v60 = vld [vmem:[%s1098_s1 + $0x108] sm:$0xff] }
  0xec   :  { %v369_v19 = vmul.f32 %v297_v1, %v148_v13  ;;  %v393_v20 = vmul.f32 %v321_v2, %v148_v13  ;;  %v417_v21 = vmul.f32 %v345_v3, %v148_v13  ;;  %v150_v22 = vpop.f32.mrb[3].mxu0  ;;  %v351_v2 = vld [vmem:[%s1098_s1 + $0x1c8] sm:$0xff] }
  0xed   :  { %v370_v25 = vmul.f32 %v298_v7, %v150_v22  ;;  %v394_v26 = vmul.f32 %v322_v8, %v150_v22  ;;  %v418_v27 = vmul.f32 %v346_v9, %v150_v22  ;;  %v464_v28 = vadd.f32 %v371_v10, %v368_v15  ;;  %v664_v30 = vpop.f32.mrb[2].mxu1  ;;  %v311_v3 = vld [vmem:[%s1098_s1 + $0x88] sm:$0xff] }
  0xee   :  { %v438_v33 = vadd.f32 %v369_v19, %v366_v62  ;;  %v477_v34 = vadd.f32 %v393_v20, %v390_v63  ;;  %v516_v35 = vadd.f32 %v417_v21, %v414_v0  ;;  %v503_v36 = vadd.f32 %v395_v11, %v392_v16  ;;  %v265_v40 = vpop.f32.mrb[3].mxu1  ;;  %v335_v10 = vld [vmem:[%s1098_s1 + $0x148] sm:$0xff]  ;;  %v304_v11 = vld [vmem:[%s1098_s1 + $0x50] sm:$0xff] }
  0xef   :  { %v451_v41 = vadd.f32 %v370_v25, %v367_v5  ;;  %v490_v42 = vadd.f32 %v394_v26, %v391_v6  ;;  %v529_v43 = vadd.f32 %v418_v27, %v415_v18  ;;  %v542_v44 = vadd.f32 %v419_v14, %v416_v17  ;;  %v154_v45 = vpop.f32.mrb[4].mxu0  ;;  %v359_v16 = vld [vmem:[%s1098_s1 + $0x208] sm:$0xff]  ;;  %v328_v18 = vld [vmem:[%s1098_s1 + $0x110] sm:$0xff] }
  0xf0   :  { %v372_v47 = vmul.f32 %v300_v23, %v154_v45  ;;  %v396_v48 = vmul.f32 %v324_v24, %v154_v45  ;;  %v420_v49 = vmul.f32 %v348_v29, %v154_v45  ;;  %v937_v50 = vmul.f32 %v664_v30, %v305_v31  ;;  %v156_v51 = vpop.f32.mrb[5].mxu0  ;;  %v352_v19 = vld [vmem:[%s1098_s1 + $0x1d0] sm:$0xff]  ;;  %v317_v45 = vld [vmem:[%s1098_s1 + $0xb8] sm:$0xff] }
  0xf1   :  { %v401_v54 = vmul.f32 %v664_v30, %v329_v37  ;;  %v945_v55 = vmul.f32 %v664_v30, %v353_v38  ;;  %v373_v56 = vmul.f32 %v301_v32, %v156_v51  ;;  %v397_v57 = vmul.f32 %v325_v39, %v156_v51  ;;  %v667_v61 = vpop.f32.mrb[4].mxu1  ;;  %v308_v24 = vld [vmem:[%s1098_s1 + $0x70] sm:$0xff]  ;;  %v306_v38 = vld [vmem:[%s1098_s1 + $0x60] sm:$0xff] }
  0xf2   :  { %v439_v62 = vadd.f32 %v438_v33, %v372_v47  ;;  %v478_v63 = vadd.f32 %v477_v34, %v396_v48  ;;  %v517_v0 = vadd.f32 %v516_v35, %v420_v49  ;;  %v421_v1 = vmul.f32 %v349_v46, %v156_v51  ;;  %v275_v4 = vpop.f32.mrb[5].mxu1  ;;  %v332_v25 = vld [vmem:[%s1098_s1 + $0x130] sm:$0xff]  ;;  %v330_v39 = vld [vmem:[%s1098_s1 + $0x120] sm:$0xff] }
  0xf3   :  { %v452_v5 = vadd.f32 %v451_v41, %v373_v56  ;;  %v491_v6 = vadd.f32 %v490_v42, %v397_v57  ;;  %v374_v7 = vmul.f32 %v302_v52, %v265_v40  ;;  %v398_v8 = vmul.f32 %v326_v53, %v265_v40  ;;  %v160_v9 = vpop.f32.mrb[6].mxu0  ;;  %v356_v26 = vld [vmem:[%s1098_s1 + $0x1f0] sm:$0xff]  ;;  %v341_v52 = vld [vmem:[%s1098_s1 + $0x178] sm:$0xff]  ;;  %v307_v53 = vld [vmem:[%s1098_s1 + $0x68] sm:$0xff] }
  0xf4   :  { %v530_v12 = vadd.f32 %v529_v43, %v421_v1  ;;  %v422_v13 = vmul.f32 %v350_v58, %v265_v40  ;;  %v375_v14 = vmul.f32 %v303_v59, %v160_v9  ;;  %v399_v15 = vmul.f32 %v327_v60, %v160_v9  ;;  %v162_v17 = vpop.f32.mrb[7].mxu0  ;;  %v365_v60 = vld [vmem:[%s1098_s1 + $0x238] sm:$0xff]  ;;  %v338_v1 = vld [vmem:[%s1098_s1 + $0x160] sm:$0xff] }
  0xf5   :  { %v465_v20 = vadd.f32 %v464_v28, %v374_v7  ;;  %v504_v21 = vadd.f32 %v503_v36, %v398_v8  ;;  %v423_v22 = vmul.f32 %v351_v2, %v160_v9  ;;  %v977_v23 = vmul.f32 %v667_v61, %v311_v3  ;;  %v670_v27 = vpop.f32.mrb[6].mxu1  ;;  %v362_v2 = vld [vmem:[%s1098_s1 + $0x220] sm:$0xff] }
  0xf6   :  { %v543_v29 = vadd.f32 %v542_v44, %v422_v13  ;;  %v440_v30 = vadd.f32 %v439_v62, %v375_v14  ;;  %v479_v28 = vadd.f32 %v478_v63, %v399_v15  ;;  %v407_v31 = vmul.f32 %v667_v61, %v335_v10  ;;  %v285_v32 = vpop.f32.mrb[7].mxu1  ;;  %v354_v44 = vld [vmem:[%s1098_s1 + $0x1e0] sm:$0xff]  ;;  %v309_v13 = vld [vmem:[%s1098_s1 + $0x78] sm:$0xff] }
  0xf7   :  { %v518_v33 = vadd.f32 %v517_v0, %v423_v22  ;;  %v431_v34 = vmul.f32 %v667_v61, %v359_v16  ;;  %v376_v35 = vmul.f32 %v304_v11, %v162_v17  ;;  %v400_v36 = vmul.f32 %v328_v18, %v162_v17  ;;  %v166_v37 = vpop.f32.mrb[8].mxu0  ;;  %v333_v14 = vld [vmem:[%s1098_s1 + $0x138] sm:$0xff] }
  0xf8   :  { %v424_v40 = vmul.f32 %v352_v19, %v162_v17  ;;  %v380_v41 = vmul.f32 %v308_v24, %v275_v4  ;;  %v404_v42 = vmul.f32 %v332_v25, %v275_v4  ;;  %v428_v43 = vmul.f32 %v356_v26, %v275_v4  ;;  %v168_v46 = vpop.f32.mrb[9].mxu0  ;;  %v357_v19 = vld [vmem:[%s1098_s1 + $0x1f8] sm:$0xff]  ;;  %v334_v26 = vld [vmem:[%s1098_s1 + $0x140] sm:$0xff] }
  0xf9   :  { %v453_v47 = vadd.f32 %v452_v5, %v376_v35  ;;  %v492_v48 = vadd.f32 %v491_v6, %v400_v36  ;;  %v466_v49 = vadd.f32 %v465_v20, %v937_v50  ;;  %v505_v51 = vadd.f32 %v504_v21, %v401_v54  ;;  %v331_v50 = vld [vmem:[%s1098_s1 + $0x128] sm:$0xff]  ;;  %v310_v20 = vld [vmem:[%s1098_s1 + $0x80] sm:$0xff] }
  0xfa   :  { %v531_v56 = vadd.f32 %v530_v12, %v424_v40  ;;  %v544_v57 = vadd.f32 %v543_v29, %v945_v55  ;;  %v378_v58 = vmul.f32 %v306_v38, %v166_v37  ;;  %v402_v59 = vmul.f32 %v330_v39, %v166_v37  ;;  %v355_v54 = vld [vmem:[%s1098_s1 + $0x1e8] sm:$0xff]  ;;  %v314_v55 = vld [vmem:[%s1098_s1 + $0xa0] sm:$0xff] }
  0xfb   :  { %v467_v61 = vadd.f32 %v466_v49, %v380_v41  ;;  %v506_v62 = vadd.f32 %v505_v51, %v404_v42  ;;  %v426_v63 = vmul.f32 %v354_v44, %v166_v37  ;;  %v389_v0 = vmul.f32 %v670_v27, %v317_v45  ;;  %v172_v3 = vpop.f32.mrb[10].mxu0 }
  0xfc   :  { %v545_v4 = vadd.f32 %v544_v57, %v428_v43  ;;  %v441_v5 = vadd.f32 %v440_v30, %v378_v58  ;;  %v480_v6 = vadd.f32 %v479_v28, %v402_v59  ;;  %v413_v7 = vmul.f32 %v670_v27, %v341_v52  ;;  %v174_v8 = vpop.f32.mrb[11].mxu0  ;;  %v337_v57 = vld [vmem:[%s1098_s1 + $0x158] sm:$0xff] }
  0xfd   :  { %v519_v9 = vadd.f32 %v518_v33, %v426_v63  ;;  %v437_v10 = vmul.f32 %v670_v27, %v365_v60  ;;  %v379_v11 = vmul.f32 %v307_v53, %v168_v46  ;;  %v403_v12 = vmul.f32 %v331_v50, %v168_v46  ;;  %v358_v33 = vld [vmem:[%s1098_s1 + $0x200] sm:$0xff] }
  0xfe   :  { %v427_v15 = vmul.f32 %v355_v54, %v168_v46  ;;  %v386_v16 = vmul.f32 %v314_v55, %v285_v32  ;;  %v410_v17 = vmul.f32 %v338_v1, %v285_v32  ;;  %v434_v18 = vmul.f32 %v362_v2, %v285_v32  ;;  %v315_v1 = vld [vmem:[%s1098_s1 + $0xa8] sm:$0xff] }
  0xff   :  { %v454_v21 = vadd.f32 %v453_v47, %v379_v11  ;;  %v493_v22 = vadd.f32 %v492_v48, %v403_v12  ;;  %v468_v24 = vadd.f32 %v467_v61, %v977_v23  ;;  %v507_v25 = vadd.f32 %v506_v62, %v407_v31  ;;  %v178_v27 = vpop.f32.mrb[12].mxu0  ;;  %v312_v23 = vld [vmem:[%s1098_s1 + $0x90] sm:$0xff]  ;;  %v313_v48 = vld [vmem:[%s1098_s1 + $0x98] sm:$0xff] }
 0x100   :  { %v532_v29 = vadd.f32 %v531_v56, %v427_v15  ;;  %v546_v30 = vadd.f32 %v545_v4, %v431_v34  ;;  %v381_v28 = vmul.f32 %v309_v13, %v172_v3  ;;  %v405_v32 = vmul.f32 %v333_v14, %v172_v3  ;;  %v180_v35 = vpop.f32.mrb[13].mxu0  ;;  %v336_v34 = vld [vmem:[%s1098_s1 + $0x150] sm:$0xff]  ;;  %v361_v61 = vld [vmem:[%s1098_s1 + $0x218] sm:$0xff] }
 0x101   :  { %v469_v36 = vadd.f32 %v468_v24, %v386_v16  ;;  %v508_v37 = vadd.f32 %v507_v25, %v410_v17  ;;  %v429_v38 = vmul.f32 %v357_v19, %v172_v3  ;;  %v382_v39 = vmul.f32 %v310_v20, %v174_v8  ;;  %v360_v47 = vld [vmem:[%s1098_s1 + $0x210] sm:$0xff] }
 0x102   :  { %v547_v31 = vadd.f32 %v546_v30, %v434_v18  ;;  %v442_v40 = vadd.f32 %v441_v5, %v381_v28  ;;  %v481_v41 = vadd.f32 %v480_v6, %v405_v32  ;;  %v406_v42 = vmul.f32 %v334_v26, %v174_v8  ;;  %v339_v6 = vld [vmem:[%s1098_s1 + $0x168] sm:$0xff]  ;;  %v316_v12 = vld [vmem:[%s1098_s1 + $0xb0] sm:$0xff] }
 0x103   :  { %v470_v43 = vadd.f32 %v469_v36, %v389_v0  ;;  %v509_v44 = vadd.f32 %v508_v37, %v413_v7  ;;  %v520_v45 = vadd.f32 %v519_v9, %v429_v38  ;;  %v430_v46 = vmul.f32 %v358_v33, %v174_v8  ;;  %v184_v49 = vpop.f32.mrb[14].mxu0  ;;  %v363_v7 = vld [vmem:[%s1098_s1 + $0x228] sm:$0xff]  ;;  %v340_v17 = vld [vmem:[%s1098_s1 + $0x170] sm:$0xff] }
 0x104   :  { %v548_v51 = vadd.f32 %v547_v31, %v437_v10  ;;  %v455_v52 = vadd.f32 %v454_v21, %v382_v39  ;;  %v494_v53 = vadd.f32 %v493_v22, %v406_v42  ;;  %v384_v56 = vmul.f32 %v312_v23, %v178_v27  ;;  %v186_v58 = vpop.f32.mrb[15].mxu0  ;;  %v364_v22 = vld [vmem:[%s1098_s1 + $0x230] sm:$0xff] }
 0x105   :  { %v471_v59 = vrot.slane %v470_v43, 4  ;;  %v510_v60 = vrot.slane %v509_v44, 4  ;;  %v533_v50 = vadd.f32 %v532_v29, %v430_v46  ;;  %v408_v54 = vmul.f32 %v336_v34, %v178_v27 }
 0x106   :  { %v549_v62 = vrot.slane %v548_v51, 4  ;;  %v432_v63 = vmul.f32 %v360_v47, %v178_v27  ;;  %v443_v0 = vadd.f32 %v442_v40, %v384_v56  ;;  %v385_v55 = vmul.f32 %v313_v48, %v180_v35 }
 0x107   :  { %v472_v2 = vadd.f32 %v471_v59, %v470_v43  ;;  %v511_v3 = vadd.f32 %v510_v60, %v509_v44  ;;  %v482_v4 = vadd.f32 %v481_v41, %v408_v54  ;;  %v409_v5 = vmul.f32 %v337_v57, %v180_v35  ;;  %v563_v43 = vpop.permute.xlu0 %562 }
 0x108   :  { %v550_v8 = vadd.f32 %v549_v62, %v548_v51  ;;  %v521_v9 = vadd.f32 %v520_v45, %v432_v63  ;;  %v433_v10 = vmul.f32 %v361_v61, %v180_v35  ;;  %v456_v11 = vadd.f32 %v455_v52, %v385_v55 }
 0x109   :  { %v473_v13 = vrot.slane %v472_v2, 2  ;;  %v512_v14 = vrot.slane %v511_v3, 2  ;;  %v495_v15 = vadd.f32 %v494_v53, %v409_v5  ;;  %v387_v16 = vmul.f32 %v315_v1, %v184_v49 }
 0x10a   :  { %v551_v18 = vrot.slane %v550_v8, 2  ;;  %v534_v19 = vadd.f32 %v533_v50, %v433_v10  ;;  %v411_v20 = vmul.f32 %v339_v6, %v184_v49  ;;  %v435_v21 = vmul.f32 %v363_v7, %v184_v49 }
 0x10b   :  { %v474_v24 = vadd.f32 %v473_v13, %v472_v2  ;;  %v513_v25 = vadd.f32 %v512_v14, %v511_v3  ;;  %v444_v26 = vadd.f32 %v443_v0, %v387_v16  ;;  %v388_v27 = vmul.f32 %v316_v12, %v186_v58 }
 0x10c   :  { %v552_v29 = vadd.f32 %v551_v18, %v550_v8  ;;  %v483_v30 = vadd.f32 %v482_v4, %v411_v20  ;;  %v522_v28 = vadd.f32 %v521_v9, %v435_v21  ;;  %v412_v32 = vmul.f32 %v340_v17, %v186_v58 }
 0x10d   :  { %v475_v33 = vrot.slane %v474_v24, 1  ;;  %v514_v35 = vrot.slane %v513_v25, 1  ;;  %v445_v36 = vrot.slane %v444_v26, 4  ;;  %v436_v37 = vmul.f32 %v364_v22, %v186_v58 }
 0x10e   :  { %v553_v38 = vrot.slane %v552_v29, 1  ;;  %v484_v39 = vrot.slane %v483_v30, 4  ;;  %v523_v23 = vrot.slane %v522_v28, 4  ;;  %v457_v31 = vadd.f32 %v456_v11, %v388_v27 }
 0x10f   :  { %v476_v40 = vadd.f32 %v475_v33, %v474_v24  ;;  %v515_v41 = vadd.f32 %v514_v35, %v513_v25  ;;  %v446_v42 = vadd.f32 %v445_v36, %v444_v26  ;;  %v496_v34 = vadd.f32 %v495_v15, %v412_v32 }
 0x110   :  { %v554_v44 = vadd.f32 %v553_v38, %v552_v29  ;;  %v485_v45 = vadd.f32 %v484_v39, %v483_v30  ;;  %v524_v46 = vadd.f32 %v523_v23, %v522_v28  ;;  %v458_v47 = vrot.slane %v457_v31, 4 }
 0x111   :  { %v447_v48 = vrot.slane %v446_v42, 2  ;;  %v497_v49 = vrot.slane %v496_v34, 4  ;;  %v535_v51 = vadd.f32 %v534_v19, %v436_v37  ;;  %v567_v52 = vadd.f32 %v563_v43, %v476_v40 }
 0x112   :  { %v486_v53 = vrot.slane %v485_v45, 2  ;;  %v525_v56 = vrot.slane %v524_v46, 2  ;;  %v459_v57 = vadd.f32 %v458_v47, %v457_v31  ;;  %v570_v58 = vadd.f32 %v563_v43, %v515_v41 }
 0x113   :  { %v448_v59 = vadd.f32 %v447_v48, %v446_v42  ;;  %v498_v60 = vadd.f32 %v497_v49, %v496_v34  ;;  %v536_v50 = vrot.slane %v535_v51, 4  ;;  %v573_v54 = vadd.f32 %v563_v43, %v554_v44 }
 0x114   :  { %v487_v61 = vadd.f32 %v486_v53, %v485_v45  ;;  %v526_v62 = vadd.f32 %v525_v56, %v524_v46  ;;  %v460_v63 = vrot.slane %v459_v57, 2  ;;  %v596_v0 = vrot.slane %v570_v58, 7 }
 0x115   :  { %v449_v55 = vrot.slane %v448_v59, 1  ;;  %v499_v1 = vrot.slane %v498_v60, 2  ;;  %v537_v2 = vadd.f32 %v536_v50, %v535_v51  ;;  %v599_v3 = vrot.slane %v573_v54, 6 }
 0x116   :  { %v488_v4 = vrot.slane %v487_v61, 1  ;;  %v527_v5 = vrot.slane %v526_v62, 1  ;;  %v461_v6 = vadd.f32 %v460_v63, %v459_v57  ;;  %v597_v7 = vsel %vm587_vm1, %v596_v0, %v567_v52 }
 0x117   :  { %v450_v8 = vadd.f32 %v449_v55, %v448_v59  ;;  %v500_v9 = vadd.f32 %v499_v1, %v498_v60  ;;  %v538_v10 = vrot.slane %v537_v2, 2  ;;  %v598_v11 = vsel %vm589_vm2, %v596_v0, %v597_v7 }
 0x118   :  { %v489_v12 = vadd.f32 %v488_v4, %v487_v61  ;;  %v462_v13 = vrot.slane %v461_v6, 1  ;;  %v600_v14 = vsel %vm592_vm3, %v599_v3, %v598_v11  ;;  %v528_v15 = vadd.f32 %v527_v5, %v526_v62 }
 0x119   :  { %v501_v16 = vrot.slane %v500_v9, 1  ;;  %v539_v17 = vadd.f32 %v538_v10, %v537_v2  ;;  %v601_v18 = vsel %vm594_vm4, %v599_v3, %v600_v14  ;;  %v565_v20 = vadd.f32 %v563_v43, %v450_v8 }
 0x11a   :  { %v463_v19 = vadd.f32 %v462_v13, %v461_v6  ;;  %605 = vst [vmem:[%s1099_s4 + $0x8] sm:$0x7] %v601_v18  ;;  %v568_v24 = vadd.f32 %v563_v43, %v489_v12  ;;  %v571_v29 = vadd.f32 %v563_v43, %v528_v15 }
 0x11b   :  { %v502_v21 = vadd.f32 %v501_v16, %v500_v9  ;;  %v540_v22 = vrot.slane %v539_v17, 1 }
 0x11c   :  { %v566_v25 = vadd.f32 %v563_v43, %v463_v19 }
 0x11d   :  { %v541_v26 = vadd.f32 %v540_v22, %v539_v17  ;;  %v569_v27 = vadd.f32 %v563_v43, %v502_v21 }
 0x11e   :  { %v583_v30 = vcombine.low %v565_v20, %v566_v25 }
 0x11f   :  { %v572_v28 = vadd.f32 %v563_v43, %v541_v26  ;;  %v584_v32 = vcombine.low %v568_v24, %v569_v27 }
 0x121   :  { %v585_v33 = vcombine.low %v571_v29, %v572_v28  ;;  %v586_v35 = vrot.slane %v584_v32, 7 }
 0x123   :  { %v588_v36 = vsel %vm587_vm1, %v586_v35, %v583_v30  ;;  %v591_v37 = vrot.slane %v585_v33, 6 }
 0x124   :  { %v590_v38 = vsel %vm589_vm2, %v586_v35, %v588_v36 }
 0x125   :  { %v593_v39 = vsel %vm592_vm3, %v591_v37, %v590_v38 }
 0x126   :  { %v595_v23 = vsel %vm594_vm4, %v591_v37, %v593_v39 }
 0x127   :  { %604 = vst [vmem:[%s1099_s4] sm:$0x77] %v595_v23 }

</bundles_post_ra>
